<compile_context>
chip_gen: v6e
topology: v6e:2x2x1
jax: 0.10.0
libtpu: 0.0.40
codegen_flags: <defaults>
</compile_context>

<pallas_src>
import jax
import jax.numpy as jnp
from jax import lax
from jax.experimental import pallas as pl
from jax.experimental.pallas import tpu as pltpu


def _round_up(n, m):
    return ((n + m - 1) // m) * m


def _wide_rowreduce_kernel(x_ref, w_ref, b_ref, o_ref, acc_ref):
    """output_dim == 1 path: VPU multiply + XLU lane reduction (no MXU).

    x_ref: (TB, TK) VMEM   w_ref: (1, TK) VMEM   b_ref: (1,) SMEM scalar
    o_ref: (TB, 1)         acc_ref: (TB, 1) f32 VMEM scratch
    """
    k = pl.program_id(1)

    @pl.when(k == 0)
    def _init():
        acc_ref[...] = jnp.zeros_like(acc_ref)

    # (TB, TK) * (1, TK) -> VALU; lane reduce -> XLU.  Partial sum: (TB, 1).
    acc_ref[...] += jnp.sum(x_ref[...] * w_ref[...], axis=-1, keepdims=True)

    @pl.when(k == pl.num_programs(1) - 1)
    def _finalize():
        o_ref[...] = (acc_ref[...] + b_ref[0]).astype(o_ref.dtype)


def _wide_matmul_kernel(x_ref, w_ref, b_ref, o_ref, acc_ref):
    """General output_dim path: MXU matmul; weight stays (out_dim, K).

    x_ref: (TB, TK)   w_ref: (out_dim, TK)   b_ref: (1, out_dim)
    o_ref: (TB, out_dim)   acc_ref: (TB, out_dim) f32 scratch
    """
    k = pl.program_id(1)

    @pl.when(k == 0)
    def _init():
        acc_ref[...] = jnp.zeros_like(acc_ref)

    acc_ref[...] += lax.dot_general(
        x_ref[...], w_ref[...],
        dimension_numbers=(((1,), (1,)), ((), ())),
        preferred_element_type=jnp.float32)

    @pl.when(k == pl.num_programs(1) - 1)
    def _finalize():
        o_ref[...] = (acc_ref[...] + b_ref[...]).astype(o_ref.dtype)


def wide_forward(x, weight, bias, *, tb=512, tk=2048):
    """Wide.forward: x @ weight.T + bias.

    x:      (B, wide_dim)
    weight: (out_dim, wide_dim)  -- PyTorch nn.Linear layout, NOT pre-transposed
    bias:   (out_dim,)
    returns (B, out_dim)
    """
    B, K = x.shape
    out_dim = weight.shape[0]
    out_dtype = x.dtype

    # Batch tile: multiple of 8 (sublanes); K tile: multiple of 128 (lanes).
    TB = min(tb, _round_up(B, 8))
    TK = min(tk, _round_up(K, 128))

    B_pad = _round_up(B, TB)
    K_pad = _round_up(K, TK)

    if B_pad != B or K_pad != K:
        x = jnp.pad(x, ((0, B_pad - B), (0, K_pad - K)))
    if K_pad != K:
        weight = jnp.pad(weight, ((0, 0), (0, K_pad - K)))

    grid = (B_pad // TB, K_pad // TK)

    x_spec = pl.BlockSpec((TB, TK), lambda i, k: (i, k))
    out_spec = pl.BlockSpec((TB, out_dim), lambda i, k: (i, 0))
    acc_scratch = pltpu.VMEM((TB, out_dim), jnp.float32)

    compiler_params = pltpu.CompilerParams(
        dimension_semantics=("parallel", "arbitrary"),
        vmem_limit_bytes=32 * 1024 * 1024,
    )

    if out_dim == 1:
        # Degenerate N=1 output: pure VPU/XLU reduction, bias as SMEM scalar.
        kernel = _wide_rowreduce_kernel
        w_arg = weight                                     # (1, K_pad)
        w_spec = pl.BlockSpec((1, TK), lambda i, k: (0, k))
        b_arg = bias.reshape((1,)).astype(jnp.float32)     # SMEM scalar
        b_spec = pl.BlockSpec(memory_space=pltpu.MemorySpace.SMEM)
    else:
        kernel = _wide_matmul_kernel
        w_arg = weight                                     # (out_dim, K_pad)
        w_spec = pl.BlockSpec((out_dim, TK), lambda i, k: (0, k))
        b_arg = bias.reshape((1, out_dim))
        b_spec = pl.BlockSpec((1, out_dim), lambda i, k: (0, 0))

    out = pl.pallas_call(
        kernel,
        out_shape=jax.ShapeDtypeStruct((B_pad, out_dim), out_dtype),
        grid=grid,
        in_specs=[x_spec, w_spec, b_spec],
        out_specs=out_spec,
        scratch_shapes=[acc_scratch],
        compiler_params=compiler_params,
    )(x, w_arg, b_arg)

    return out[:B]


if __name__ == "__main__":
    key = jax.random.PRNGKey(0)
    k_x, k_w, k_b, k_w2, k_b2 = jax.random.split(key, 5)

    # Shapes consistent with the module: Wide(wide_dim=32, output_dim=1), batch=8.
    B, wide_dim, output_dim = 8, 32, 1

    x = jax.random.normal(k_x, (B, wide_dim), dtype=jnp.float32)
    bound = 1.0 / (wide_dim ** 0.5)
    weight = jax.random.uniform(k_w, (output_dim, wide_dim),
                                minval=-bound, maxval=bound, dtype=jnp.float32)
    bias = jax.random.uniform(k_b, (output_dim,),
                              minval=-bound, maxval=bound, dtype=jnp.float32)

    out = jax.block_until_ready(wide_forward(x, weight, bias))
    ref = x @ weight.T + bias
    assert out.shape == (B, output_dim)
    assert jnp.allclose(out, ref, atol=1e-5, rtol=1e-5)

    # Also exercise the general (output_dim > 1) MXU path.
    od2 = 4
    weight2 = jax.random.uniform(k_w2, (od2, wide_dim),
                                 minval=-bound, maxval=bound, dtype=jnp.float32)
    bias2 = jax.random.uniform(k_b2, (od2,),
                               minval=-bound, maxval=bound, dtype=jnp.float32)
    out2 = jax.block_until_ready(wide_forward(x, weight2, bias2))
    ref2 = x @ weight2.T + bias2
    assert out2.shape == (B, od2)
    assert jnp.allclose(out2, ref2, atol=1e-5, rtol=1e-5)

    print("KERNEL_OK")
</pallas_src>

<mosaic_0001>
module attributes {stable_mosaic.version = 11 : i64} {
  func.func @_wide_rowreduce_kernel(%arg0: i32, %arg1: i32, %arg2: memref<8x128xf32, #tpu.memory_space<vmem>>, %arg3: memref<1x128xf32, #tpu.memory_space<vmem>>, %arg4: memref<1xf32, #tpu.memory_space<smem>>, %arg5: memref<8x1xf32, #tpu.memory_space<vmem>>, %arg6: memref<8x1xf32, #tpu.memory_space<vmem>>) attributes {dimension_semantics = [#tpu.dimension_semantics<parallel>, #tpu.dimension_semantics<arbitrary>], iteration_bounds = array<i64: 1, 1>, scalar_prefetch = 0 : i64, scratch_operands = 1 : i64, tpu.core_type = #tpu.core_type<tc>, window_params = [{transform_indices = @transform_0, window_bounds = array<i64: 8, 128>}, {transform_indices = @transform_1, window_bounds = array<i64: 1, 128>}, {transform_indices = @transform_2, window_bounds = array<i64: 1>}, {transform_indices = @transform_3, window_bounds = array<i64: 8, 1>}]} {
    %c0_i32 = arith.constant 0 : i32
    %0 = arith.cmpi eq, %arg1, %c0_i32 : i32
    %1 = arith.extui %0 : i1 to i32
    %c0_i32_0 = arith.constant 0 : i32
    %2 = arith.cmpi ne, %1, %c0_i32_0 : i32
    scf.if %2 {
      %cst_10 = arith.constant 0.000000e+00 : f32
      %15 = vector.broadcast %cst_10 : f32 to vector<8x1xf32>
      %c0_11 = arith.constant 0 : index
      %c0_12 = arith.constant 0 : index
      %16 = vector.load %arg6[%c0_11, %c0_12] : memref<8x1xf32, #tpu.memory_space<vmem>>, vector<8x1xf32>
      tpu.vector_store %arg6[%c0_11, %c0_12], %15 {strides = array<i32>} : memref<8x1xf32, #tpu.memory_space<vmem>>, vector<8x1xf32>,
    } else {
    }
    %c0 = arith.constant 0 : index
    %c0_1 = arith.constant 0 : index
    %3 = vector.load %arg6[%c0, %c0_1] : memref<8x1xf32, #tpu.memory_space<vmem>>, vector<8x1xf32>
    %c0_2 = arith.constant 0 : index
    %c0_3 = arith.constant 0 : index
    %4 = vector.load %arg2[%c0_2, %c0_3] : memref<8x128xf32, #tpu.memory_space<vmem>>, vector<8x128xf32>
    %c0_4 = arith.constant 0 : index
    %c0_5 = arith.constant 0 : index
    %5 = vector.load %arg3[%c0_4, %c0_5] : memref<1x128xf32, #tpu.memory_space<vmem>>, vector<1x128xf32>
    %6 = vector.broadcast %5 : vector<1x128xf32> to vector<8x128xf32>
    %7 = arith.mulf %4, %6 : vector<8x128xf32>
    %cst = arith.constant dense<0.000000e+00> : vector<8xf32>
    %8 = vector.multi_reduction <add>, %7, %cst [1] : vector<8x128xf32> to vector<8xf32>
    %9 = vector.shape_cast %8 : vector<8xf32> to vector<8x1xf32>
    %10 = arith.addf %3, %9 : vector<8x1xf32>
    %c0_6 = arith.constant 0 : index
    %c0_7 = arith.constant 0 : index
    %11 = vector.load %arg6[%c0_6, %c0_7] : memref<8x1xf32, #tpu.memory_space<vmem>>, vector<8x1xf32>
    tpu.vector_store %arg6[%c0_6, %c0_7], %10 {strides = array<i32>} : memref<8x1xf32, #tpu.memory_space<vmem>>, vector<8x1xf32>,
    %c0_i32_8 = arith.constant 0 : i32
    %12 = arith.cmpi eq, %arg1, %c0_i32_8 : i32
    %13 = arith.extui %12 : i1 to i32
    %c0_i32_9 = arith.constant 0 : i32
    %14 = arith.cmpi ne, %13, %c0_i32_9 : i32
    scf.if %14 {
      %c0_10 = arith.constant 0 : index
      %c0_11 = arith.constant 0 : index
      %15 = vector.load %arg6[%c0_10, %c0_11] : memref<8x1xf32, #tpu.memory_space<vmem>>, vector<8x1xf32>
      %c0_12 = arith.constant 0 : index
      %16 = memref.load %arg4[%c0_12] : memref<1xf32, #tpu.memory_space<smem>>
      %17 = vector.broadcast %16 : f32 to vector<8x1xf32>
      %18 = arith.addf %15, %17 : vector<8x1xf32>
      %c0_13 = arith.constant 0 : index
      %c0_14 = arith.constant 0 : index
      %19 = vector.load %arg5[%c0_13, %c0_14] : memref<8x1xf32, #tpu.memory_space<vmem>>, vector<8x1xf32>
      tpu.vector_store %arg5[%c0_13, %c0_14], %18 {strides = array<i32>} : memref<8x1xf32, #tpu.memory_space<vmem>>, vector<8x1xf32>,
    } else {
    }
    return
  }
  func.func @transform_0(%arg0: i32, %arg1: i32) -> (i32, i32) {
    %c0_i32 = arith.constant 0 : i32
    return %arg0, %arg1 : i32, i32
  }
  func.func @transform_1(%arg0: i32, %arg1: i32) -> (i32, i32) {
    %c0_i32 = arith.constant 0 : i32
    %c0_i32_0 = arith.constant 0 : i32
    return %c0_i32, %arg1 : i32, i32
  }
  func.func @transform_2(%arg0: i32, %arg1: i32) -> i32 {
    %c0_i32 = arith.constant 0 : i32
    %c0_i32_0 = arith.constant 0 : i32
    return %c0_i32 : i32
  }
  func.func @transform_3(%arg0: i32, %arg1: i32) -> (i32, i32) {
    %c0_i32 = arith.constant 0 : i32
    %c0_i32_0 = arith.constant 0 : i32
    return %arg0, %c0_i32 : i32, i32
  }
}

</mosaic_0001>

<bundles_post_ra>
// kernel: tpu_custom_call.1
= control target key start
LH: loop header
LB: loop body
LE: loop exit
PB: predicated region body
PF: predicated region fallthrough
CT: control target
= control target key end

     0   :  { %9 = vsyncpa [#allocation5], 0  ;;  %s86_s12 = smov [#allocation4]   ;;  %s120_s0 = inlined_call_operand.hbm [shape: f32[8,128], index: 0, kind: input, shape index: {}]   ;;  %s121_s1 = inlined_call_operand.vmem [shape: f32[1,128], index: 1, kind: input, shape index: {}]   ;;  %s122_s2 = inlined_call_operand.<no memory space> [shape: f32[1], index: 2, kind: input, shape index: {}]   ;;  %s123_s3 = inlined_call_operand.vmem [shape: f32[8,1], index: 3, kind: output, shape index: {}]  }
   0x1   :  { %s16_s13 = sshll.u32 %s86_s12, 4  ;;  %s17_s13 = int_to_ptr.vmem [resolvable:$true] %s16_s13 }
   0x2   :  { %s72_s14 = scalar_lea.vmem %s17_s13, 128  ;;  %p77_p1 = scmp.lt.s32.totalorder %s17_s13, %s17_s13 }
   0x3   :  { %p73_p0 = scmp.ne.s32.totalorder %s17_s13, %s72_s14  ;;  %p78_p2 = scmp.lt.s32.totalorder %s72_s14, %s72_s14 }
   0x5   :  { %p79_p3 = por %p78_p2, %p77_p1 }
   0x7   :  { %p80_p4 = pnand %p79_p3, %p73_p0 }
   0x9   :  { %83 = shalt.err (!%p80_p4)
}
   0xa   :  { %19 = dma.hbm_to_vmem [thread:$0]  %s120_s0, 128, %s17_s13, [#allocation5]  }
   0xb   :  { %84 = dma.done.wait [#allocation5], 128  }
   0xc   :  { %85 = vsyncadd [#allocation5], 4294967168  ;;  %vm31_vm0 = vcmask 7168   ;;  %v87_v0 = vmov 0.0   ;;  %v34_v1 = vld [vmem:[#allocation4] sm:$0xff]  ;;  %v53_v7 = vstv %s122_s2 }
   0xd   :  { %32 = vst.msk [vmem:[#allocation2] sm:$0xff] %vm31_vm0, %v87_v0  ;;  %v61_v2 = vld [vmem:[%s121_s1] ss:$0 sm:$0xff] }
   0xe   :  { %v42_v3 = vmul.f32 %v61_v2, %v34_v1 }
  0x10   :  { %43 = vadd.xlane.f32.xlu0 %v42_v3 }
  0x14   :  { %v33_v4 = vld [vmem:[#allocation2] sm:$0xff] }
  0x99   :  { %v44_v5 = vpop.xlane.xlu0 %43 }
  0x9a   :  { %v45_v6 = vadd.f32 %v44_v5, %v33_v4 }
  0x9c   :  { %47 = vst.msk [vmem:[#allocation2] sm:$0xff] %vm31_vm0, %v45_v6 }
  0xa3   :  { %v51_v8 = vld [vmem:[#allocation2] sm:$0xff] }
  0xa4   :  { %v54_v9 = vadd.f32 %v53_v7, %v51_v8 }
  0xa6   :  { %55 = vst.msk [vmem:[%s123_s3] sm:$0xff] %vm31_vm0, %v54_v9 }
  0xa7   :  { %60 = vsyncpa [#allocation5], 1 }

</bundles_post_ra>
